<compile_context>
chip_gen: v6e
topology: v6e:2x2x1
jax: 0.10.0
libtpu: 0.0.40
codegen_flags: <defaults>
</compile_context>

<pallas_src>
import jax
import jax.numpy as jnp
from jax.experimental import pallas as pl
from jax.experimental.pallas import tpu as pltpu

EPS = 1e-5  # torch.nn.functional.layer_norm default


# ------------------------------ kernel ---------------------------------------
def _layernorm_kernel(x_ref, g_ref, b_ref, o_ref):
    """Row-wise LayerNorm over the last (lane) dimension.

    x_ref : [R, H]   rows to normalize
    g_ref : [1, H]   gamma (broadcast over rows)
    b_ref : [1, H]   beta  (broadcast over rows)
    o_ref : [R, H]   output
    """
    x = x_ref[...].astype(jnp.float32)
    gamma = g_ref[...]
    beta = b_ref[...]

    mu = jnp.mean(x, axis=-1, keepdims=True)
    xc = x - mu
    var = jnp.mean(xc * xc, axis=-1, keepdims=True)
    y = xc * jax.lax.rsqrt(var + EPS) * gamma + beta
    o_ref[...] = y.astype(o_ref.dtype)


# ------------------------------ wrapper ---------------------------------------
def layer_norm(x, gamma, beta, *, block_rows=256):
    """Pallas LayerNorm matching F.layer_norm(x, x.shape[-1:], gamma, beta)."""
    *lead, H = x.shape
    rows = 1
    for d in lead:
        rows *= d

    # Wrapper-side layout: flatten leading dims, keep H as the lane dimension.
    x2 = x.reshape(rows, H)
    g2 = gamma.reshape(1, H).astype(jnp.float32)
    b2 = beta.reshape(1, H).astype(jnp.float32)

    if rows <= block_rows:
        # Grid-free: whole problem resident in VMEM, single launch, no
        # per-grid-step prologue cost.
        out = pl.pallas_call(
            _layernorm_kernel,
            out_shape=jax.ShapeDtypeStruct((rows, H), x.dtype),
        )(x2, g2, b2)
    else:
        # Large-input path: tile rows; gamma/beta use a constant index map so
        # they are not re-staged per step.
        n_blocks = pl.cdiv(rows, block_rows)
        padded = n_blocks * block_rows
        xp = jnp.pad(x2, ((0, padded - rows), (0, 0))) if padded != rows else x2
        out = pl.pallas_call(
            _layernorm_kernel,
            out_shape=jax.ShapeDtypeStruct((padded, H), x.dtype),
            grid=(n_blocks,),
            in_specs=[
                pl.BlockSpec((block_rows, H), lambda i: (i, 0)),
                pl.BlockSpec((1, H), lambda i: (0, 0)),
                pl.BlockSpec((1, H), lambda i: (0, 0)),
            ],
            out_specs=pl.BlockSpec((block_rows, H), lambda i: (i, 0)),
            compiler_params=pltpu.CompilerParams(
                dimension_semantics=("parallel",)),
        )(xp, g2, b2)
        out = out[:rows]

    return out.reshape(*lead, H)


# ------------------------------ reference -------------------------------------
def layer_norm_ref(x, gamma, beta):
    x32 = x.astype(jnp.float32)
    mu = jnp.mean(x32, axis=-1, keepdims=True)
    var = jnp.mean((x32 - mu) ** 2, axis=-1, keepdims=True)
    y = (x32 - mu) * jax.lax.rsqrt(var + EPS) * gamma + beta
    return y.astype(x.dtype)


# -------------------------------- main -----------------------------------------
if __name__ == "__main__":
    B, S, H = 2, 8, 32
    key = jax.random.PRNGKey(0)
    k_x, k_g, k_big = jax.random.split(key, 3)

    x = jax.random.normal(k_x, (B, S, H), dtype=jnp.float32)
    # gamma is a learnable parameter (init ones); use a non-trivial value so the
    # affine path is exercised. beta is a registered buffer of zeros.
    gamma = 1.0 + 0.1 * jax.random.normal(k_g, (H,), dtype=jnp.float32)
    beta = jnp.zeros((H,), jnp.float32)

    # Small path: single grid-free call over the whole [B*S, H] tensor.
    y = layer_norm(x, gamma, beta)
    jax.block_until_ready(y)
    assert y.shape == x.shape
    assert jnp.allclose(y, layer_norm_ref(x, gamma, beta), atol=1e-4, rtol=1e-4)

    # Large path: exercises the row-tiled grid with constant-index gamma/beta.
    x_big = jax.random.normal(k_big, (4, 128, H), dtype=jnp.float32)
    y_big = layer_norm(x_big, gamma, beta)
    jax.block_until_ready(y_big)
    assert y_big.shape == x_big.shape
    assert jnp.allclose(y_big, layer_norm_ref(x_big, gamma, beta),
                        atol=1e-4, rtol=1e-4)

    print("KERNEL_OK")
</pallas_src>

<mosaic_0001>
module attributes {stable_mosaic.version = 11 : i64} {
  func.func @_layernorm_kernel(%arg0: memref<16x32xf32, #tpu.memory_space<vmem>>, %arg1: memref<1x32xf32, #tpu.memory_space<vmem>>, %arg2: memref<1x32xf32, #tpu.memory_space<vmem>>, %arg3: memref<16x32xf32, #tpu.memory_space<vmem>>) attributes {dimension_semantics = [], scalar_prefetch = 0 : i64, scratch_operands = 0 : i64, tpu.core_type = #tpu.core_type<tc>} {
    %c0 = arith.constant 0 : index
    %c0_0 = arith.constant 0 : index
    %0 = vector.load %arg0[%c0, %c0_0] : memref<16x32xf32, #tpu.memory_space<vmem>>, vector<16x32xf32>
    %c0_1 = arith.constant 0 : index
    %c0_2 = arith.constant 0 : index
    %1 = vector.load %arg1[%c0_1, %c0_2] : memref<1x32xf32, #tpu.memory_space<vmem>>, vector<1x32xf32>
    %c0_3 = arith.constant 0 : index
    %c0_4 = arith.constant 0 : index
    %2 = vector.load %arg2[%c0_3, %c0_4] : memref<1x32xf32, #tpu.memory_space<vmem>>, vector<1x32xf32>
    %cst = arith.constant dense<0.000000e+00> : vector<16xf32>
    %3 = vector.multi_reduction <add>, %0, %cst [1] : vector<16x32xf32> to vector<16xf32>
    %4 = vector.shape_cast %3 : vector<16xf32> to vector<16x1xf32>
    %cst_5 = arith.constant 3.200000e+01 : f32
    %5 = vector.broadcast %cst_5 : f32 to vector<16x1xf32>
    %6 = arith.divf %4, %5 : vector<16x1xf32>
    %7 = vector.broadcast %6 : vector<16x1xf32> to vector<16x32xf32>
    %8 = arith.subf %0, %7 : vector<16x32xf32>
    %9 = arith.mulf %8, %8 : vector<16x32xf32>
    %cst_6 = arith.constant dense<0.000000e+00> : vector<16xf32>
    %10 = vector.multi_reduction <add>, %9, %cst_6 [1] : vector<16x32xf32> to vector<16xf32>
    %11 = vector.shape_cast %10 : vector<16xf32> to vector<16x1xf32>
    %cst_7 = arith.constant 3.200000e+01 : f32
    %12 = vector.broadcast %cst_7 : f32 to vector<16x1xf32>
    %13 = arith.divf %11, %12 : vector<16x1xf32>
    %cst_8 = arith.constant 9.99999974E-6 : f32
    %14 = vector.broadcast %cst_8 : f32 to vector<16x1xf32>
    %15 = arith.addf %13, %14 : vector<16x1xf32>
    %16 = math.rsqrt %15 : vector<16x1xf32>
    %17 = vector.broadcast %16 : vector<16x1xf32> to vector<16x32xf32>
    %18 = arith.mulf %8, %17 : vector<16x32xf32>
    %19 = vector.broadcast %1 : vector<1x32xf32> to vector<16x32xf32>
    %20 = arith.mulf %18, %19 : vector<16x32xf32>
    %21 = vector.broadcast %2 : vector<1x32xf32> to vector<16x32xf32>
    %22 = arith.addf %20, %21 : vector<16x32xf32>
    %c0_9 = arith.constant 0 : index
    %c0_10 = arith.constant 0 : index
    %23 = vector.load %arg3[%c0_9, %c0_10] : memref<16x32xf32, #tpu.memory_space<vmem>>, vector<16x32xf32>
    tpu.vector_store %arg3[%c0_9, %c0_10], %22 {strides = array<i32>} : memref<16x32xf32, #tpu.memory_space<vmem>>, vector<16x32xf32>,
    return
  }
}

</mosaic_0001>

<bundles_post_ra>
// kernel: tpu_custom_call.1
= control target key start
LH: loop header
LB: loop body
LE: loop exit
PB: predicated region body
PF: predicated region fallthrough
CT: control target
= control target key end

     0   :  { %8 = vsyncpa [#allocation3], 0  ;;  %s198_s0 = inlined_call_operand.hbm [shape: f32[16,32], index: 0, kind: input, shape index: {}]   ;;  %s199_s1 = inlined_call_operand.vmem [shape: f32[1,32], index: 1, kind: input, shape index: {}]   ;;  %s200_s2 = inlined_call_operand.vmem [shape: f32[1,32], index: 2, kind: input, shape index: {}]   ;;  %s201_s3 = inlined_call_operand.hbm [shape: f32[16,32], index: 3, kind: output, shape index: {}]  }
   0x1   :  { %9 = vsyncpa [#allocation4], 0  ;;  %s150_s12 = smov [#allocation2]  }
   0x2   :  { %s15_s13 = sshll.u32 %s150_s12, 4  ;;  %s16_s13 = int_to_ptr.vmem [resolvable:$true] %s15_s13 }
   0x3   :  { %s114_s14 = scalar_lea.vmem %s16_s13, 256  ;;  %p119_p1 = scmp.lt.s32.totalorder %s16_s13, %s16_s13 }
   0x4   :  { %p115_p0 = scmp.ne.s32.totalorder %s16_s13, %s114_s14  ;;  %p120_p2 = scmp.lt.s32.totalorder %s114_s14, %s114_s14 }
   0x6   :  { %p121_p3 = por %p120_p2, %p119_p1 }
   0x8   :  { %p122_p4 = pnand %p121_p3, %p115_p0 }
   0xa   :  { %125 = shalt.err (!%p122_p4)
}
   0xb   :  { %s151_s15 = smov 128   ;;  %s152_s16 = smov 8  }
   0xc   :  { %21 = dma.hbm_to_vmem [thread:$0]  %s198_s0, 256, %s16_s13, [#allocation3], %s151_s15, %s151_s15, %s152_s16  }
   0xd   :  { %146 = dma.done.wait [#allocation3], 256  }
   0xe   :  { %147 = vsyncadd [#allocation3], 4294967040  ;;  %vm33_vm0 = vcmask 261120   ;;  %v29_v0 = vld [vmem:[#allocation2] sm:$0xff]  ;;  %v30_v1 = vld [vmem:[#allocation2 + $0x8] sm:$0xff]  ;;  %s153_s22 = smov [#allocation5]  }
   0xf   :  { %v34_v2 = vsel %vm33_vm0, %v29_v0, 0.0  ;;  %v37_v3 = vsel %vm33_vm0, %v30_v1, 0.0  ;;  %v96_v21 = vld [vmem:[%s199_s1] ss:$0 sm:$0xff]  ;;  %s84_s23 = sshll.u32 %s153_s22, 4  ;;  %s85_s23 = int_to_ptr.vmem [resolvable:$true] %s84_s23 }
  0x10   :  { %35 = vadd.xlane.f32.xlu0 %v34_v2  ;;  %v97_v23 = vld [vmem:[%s200_s2] ss:$0 sm:$0xff]  ;;  %s126_s24 = scalar_lea.vmem %s85_s23, 256  ;;  %p131_p6 = scmp.lt.s32.totalorder %s85_s23, %s85_s23 }
  0x11   :  { %p127_p5 = scmp.ne.s32.totalorder %s85_s23, %s126_s24  ;;  %p132_p7 = scmp.lt.s32.totalorder %s126_s24, %s126_s24 }
  0x13   :  { %p133_p8 = por %p132_p7, %p131_p6 }
  0x14   :  { %38 = vadd.xlane.f32.xlu0 %v37_v3 }
  0x15   :  { %p134_p9 = pnand %p133_p8, %p127_p5 }
  0x99   :  { %v36_v4 = vpop.xlane.xlu0 %35 }
  0x9a   :  { %v41_v5 = vmul.f32 0.03125, %v36_v4 }
  0x9c   :  { %v43_v6 = vsub.f32 %v29_v0, %v41_v5 }
  0x9d   :  { %v39_v7 = vpop.xlane.xlu0 %38 }
  0x9e   :  { %v42_v8 = vmul.f32 0.03125, %v39_v7  ;;  %v45_v9 = vmul.f32 %v43_v6, %v43_v6 }
  0xa0   :  { %v44_v10 = vsub.f32 %v30_v1, %v42_v8  ;;  %v47_v11 = vsel %vm33_vm0, %v45_v9, 0.0 }
  0xa1   :  { %48 = vadd.xlane.f32.xlu1 %v47_v11 }
  0xa2   :  { %v46_v12 = vmul.f32 %v44_v10, %v44_v10 }
  0xa4   :  { %v50_v13 = vsel %vm33_vm0, %v46_v12, 0.0 }
  0xa5   :  { %51 = vadd.xlane.f32.xlu1 %v50_v13 }
 0x12a   :  { %v49_v14 = vpop.xlane.xlu1 %48 }
 0x12b   :  { %v53_v15 = vmul.f32 0.03125, %v49_v14 }
 0x12d   :  { %v55_v16 = vadd.f32 1e-05, %v53_v15 }
 0x12e   :  { %v52_v17 = vpop.xlane.xlu1 %51 }
 0x12f   :  { %102 = vrsqrt.f32 %v55_v16  ;;  %v54_v18 = vmul.f32 0.03125, %v52_v17 }
 0x131   :  { %v56_v19 = vadd.f32 1e-05, %v54_v18 }
 0x133   :  { %104 = vrsqrt.f32 %v56_v19 }
 0x13c   :  { %v103_v20 = vpop.eup %102 }
 0x13d   :  { %v59_v22 = vmul.f32 %v103_v20, %v43_v6 }
 0x13f   :  { %v67_v24 = vmul.f32 %v96_v21, %v59_v22 }
 0x140   :  { %v105_v25 = vpop.eup %104 }
 0x141   :  { %v60_v26 = vmul.f32 %v105_v25, %v44_v10  ;;  %v75_v27 = vadd.f32 %v97_v23, %v67_v24 }
 0x143   :  { %v68_v28 = vmul.f32 %v96_v21, %v60_v26  ;;  %77 = vst.msk [vmem:[#allocation5] sm:$0xff] %vm33_vm0, %v75_v27 }
 0x145   :  { %v76_v29 = vadd.f32 %v97_v23, %v68_v28 }
 0x147   :  { %78 = vst.msk [vmem:[#allocation5 + $0x8] sm:$0xff] %vm33_vm0, %v76_v29 }
 0x148   :  { %137 = shalt.err (!%p134_p9)
}
 0x149   :  { %90 = dma.vmem_to_hbm [thread:$0]  %s85_s23, 256, %s201_s3, [#allocation4], %s151_s15, %s151_s15, %s152_s16  }
 0x14a   :  { %148 = dma.done.wait [#allocation4], 256  }
 0x14b   :  { %149 = vsyncadd [#allocation4], 4294967040 }
 0x14c   :  { %94 = vsyncpa [#allocation3], 1 }
 0x14d   :  { %95 = vsyncpa [#allocation4], 1 }

</bundles_post_ra>
